<compile_context>
chip_gen: v7x
topology: tpu7x:2x2x1
jax: 0.10.0
libtpu: 0.0.40
codegen_flags: <defaults>
</compile_context>

<pallas_src>
import functools
import math

import jax
import jax.numpy as jnp
from jax.experimental import pallas as pl
from jax.experimental.pallas import tpu as pltpu


_VMEM_LIMIT_BYTES = 32 * 1024 * 1024  # explicit scoped-VMEM budget (safe on v5e/v6e/v7x)


# ----------------------------------------------------------------------------
# Kernel 1a: generic tiled dense linear  y = x @ W^T + b   (nn.Linear layout)
#   - contraction on the LAST dim of both operands (no in-kernel transpose)
#   - grid over rows of x ("parallel"), weights/bias constant-index (resident)
# ----------------------------------------------------------------------------
def _linear_kernel(x_ref, w_ref, b_ref, o_ref):
    y = jax.lax.dot_general(
        x_ref[...],                      # (tm, K)  compute dtype
        w_ref[...],                      # (N, K)   torch Linear weight layout
        dimension_numbers=(((1,), (1,)), ((), ())),
        preferred_element_type=jnp.float32,
    )
    o_ref[...] = (y + b_ref[...]).astype(o_ref.dtype)   # bias add in f32


def pallas_linear(x2d, w, b, out_dtype=None, block_m=512):
    """x2d: (M, K); w: (N, K); b: (N,) or (1, N). Returns (M, N)."""
    M, K = x2d.shape
    N = w.shape[0]
    out_dtype = out_dtype if out_dtype is not None else x2d.dtype
    tm = min(block_m, M)
    return pl.pallas_call(
        _linear_kernel,
        out_shape=jax.ShapeDtypeStruct((M, N), out_dtype),
        grid=(pl.cdiv(M, tm),),
        in_specs=[
            pl.BlockSpec((tm, K), lambda i: (i, 0)),     # x tile (pipelined)
            pl.BlockSpec((N, K), lambda i: (0, 0)),      # weight, constant index
            pl.BlockSpec((1, N), lambda i: (0, 0)),      # bias, constant index
        ],
        out_specs=pl.BlockSpec((tm, N), lambda i: (i, 0)),
        compiler_params=pltpu.CompilerParams(
            dimension_semantics=("parallel",),
            vmem_limit_bytes=_VMEM_LIMIT_BYTES,
        ),
    )(x2d, w, b.reshape(1, N))


# ----------------------------------------------------------------------------
# Kernel 1b: fused QKV projection (self-attention path).
#   One pallas_call reads each activation row tile ONCE and produces three
#   lane-dense (tm, D) outputs; the three weights stay resident across the grid.
# ----------------------------------------------------------------------------
def _qkv_projection_kernel(x_ref, wq_ref, wk_ref, wv_ref,
                           bq_ref, bk_ref, bv_ref,
                           q_ref, k_ref, v_ref):
    x = x_ref[...]                                       # (tm, K), loaded once
    for w_ref, b_ref, o_ref in ((wq_ref, bq_ref, q_ref),
                                (wk_ref, bk_ref, k_ref),
                                (wv_ref, bv_ref, v_ref)):
        y = jax.lax.dot_general(
            x, w_ref[...],
            dimension_numbers=(((1,), (1,)), ((), ())),
            preferred_element_type=jnp.float32,
        )
        o_ref[...] = (y + b_ref[...]).astype(o_ref.dtype)   # lane-dense store


def pallas_qkv_projection(x2d, wq, wk, wv, bq, bk, bv, out_dtype=None, block_m=512):
    """x2d: (M, K); w*: (N, K); b*: (N,) or (1, N). Returns (q, k, v), each (M, N)."""
    M, K = x2d.shape
    N = wq.shape[0]
    out_dtype = out_dtype if out_dtype is not None else x2d.dtype
    tm = min(block_m, M)

    row_spec = pl.BlockSpec((tm, K), lambda i: (i, 0))
    w_spec = pl.BlockSpec((N, K), lambda i: (0, 0))      # constant index -> resident
    b_spec = pl.BlockSpec((1, N), lambda i: (0, 0))
    out_spec = pl.BlockSpec((tm, N), lambda i: (i, 0))
    out_sds = jax.ShapeDtypeStruct((M, N), out_dtype)

    return pl.pallas_call(
        _qkv_projection_kernel,
        out_shape=(out_sds, out_sds, out_sds),
        grid=(pl.cdiv(M, tm),),
        in_specs=[row_spec, w_spec, w_spec, w_spec, b_spec, b_spec, b_spec],
        out_specs=(out_spec, out_spec, out_spec),
        compiler_params=pltpu.CompilerParams(
            dimension_semantics=("parallel",),
            vmem_limit_bytes=_VMEM_LIMIT_BYTES,
        ),
    )(x2d, wq, wk, wv, bq.reshape(1, N), bk.reshape(1, N), bv.reshape(1, N))


# ----------------------------------------------------------------------------
# Kernel 2: multi-head attention + fused output projection.
#   Grid (B, S // tq).  Per step:
#     q_ref   : (tq, D)    query-row tile, compute dtype
#     k_ref   : (Sk, D)    keys for this batch (constant index over the q axis)
#     v_ref   : (Sk, D)    values
#     mask_ref: (tq, Sk)   raw int8 mask (0 == masked out)
#     wo_ref  : (D, D)     output projection weight (resident)
#     bo_ref  : (1, D)     output projection bias (f32, resident)
#     o_ref   : (tq, D)    final projected output, lane-dense store
#     ctx_ref : (tq, D)    f32 VMEM scratch holding the per-head contexts
# ----------------------------------------------------------------------------
def _mha_attention_kernel(q_ref, k_ref, v_ref, mask_ref, wo_ref, bo_ref,
                          o_ref, ctx_ref, *, num_heads, scale):
    d_model = q_ref.shape[-1]
    d_k = d_model // num_heads

    # Hoisted mask work: one compare per tile, shared by every head.
    keep = mask_ref[...] != 0                                     # (tq, Sk) bool

    for h in range(num_heads):          # static unroll; loads pushed inside
        lo = h * d_k
        q_h = q_ref[:, lo:lo + d_k]                               # (tq, d_k)
        k_h = k_ref[:, lo:lo + d_k]                               # (Sk, d_k)
        v_h = v_ref[:, lo:lo + d_k]                               # (Sk, d_k)

        # q @ k^T without materializing a transpose (contract last dims).
        s = jax.lax.dot_general(
            q_h, k_h,
            dimension_numbers=(((1,), (1,)), ((), ())),
            preferred_element_type=jnp.float32,
        )                                                         # (tq, Sk) f32
        # Exact torch masked_fill(mask == 0, -1e9) semantics.
        s = jnp.where(keep, s * scale, -1000000000.0)

        # Numerically stable softmax in f32, EUP approximate reciprocal.
        s = s - jnp.max(s, axis=-1, keepdims=True)
        p = jnp.exp(s)
        p = p * pl.reciprocal(jnp.sum(p, axis=-1, keepdims=True), approx=True)

        # Per-head context written straight into the (tq, D) f32 scratch:
        # no lane-axis concatenate, single lane-dense consumer below.
        ctx_ref[:, lo:lo + d_k] = jnp.dot(
            p.astype(v_h.dtype), v_h, preferred_element_type=jnp.float32)

    # Fused output projection: ctx @ Wo^T + bo (nn.Linear semantics), one
    # depth-D MXU matmul, result stored lane-dense to HBM.
    out = jax.lax.dot_general(
        ctx_ref[...].astype(wo_ref.dtype), wo_ref[...],
        dimension_numbers=(((1,), (1,)), ((), ())),
        preferred_element_type=jnp.float32,
    )
    o_ref[...] = (out + bo_ref[...]).astype(o_ref.dtype)


def _choose_tq(seq_len, max_tq=256):
    """Pick a query-row tile that divides S and satisfies the sublane tiling
    constraints for every dtype used (int8 mask needs multiples of 32)."""
    if seq_len <= max_tq:
        return seq_len
    for cand in (256, 128, 64, 32):
        if cand <= max_tq and seq_len % cand == 0:
            return cand
    return seq_len   # fallback: no tiling


def pallas_mha_attention(q, k, v, mask8, wo, bo, *, num_heads, out_dtype, block_q=256):
    """q: (B, Sq, D); k, v: (B, Sk, D); mask8: (B, Sq, Sk) int8; wo: (D, D)."""
    B, Sq, D = q.shape
    Sk = k.shape[1]
    assert v.shape[1] == Sk and D % num_heads == 0
    tq = _choose_tq(Sq, block_q)
    n_q = Sq // tq
    scale = 1.0 / math.sqrt(D // num_heads)
    kernel = functools.partial(_mha_attention_kernel, num_heads=num_heads, scale=scale)

    return pl.pallas_call(
        kernel,
        out_shape=jax.ShapeDtypeStruct((B, Sq, D), out_dtype),
        grid=(B, n_q),
        in_specs=[
            pl.BlockSpec((None, tq, D), lambda b, i: (b, i, 0)),   # q row tile
            pl.BlockSpec((None, Sk, D), lambda b, i: (b, 0, 0)),   # K: once per batch
            pl.BlockSpec((None, Sk, D), lambda b, i: (b, 0, 0)),   # V: once per batch
            pl.BlockSpec((None, tq, Sk), lambda b, i: (b, i, 0)),  # int8 mask rows
            pl.BlockSpec((D, D), lambda b, i: (0, 0)),             # Wo resident
            pl.BlockSpec((1, D), lambda b, i: (0, 0)),             # bo resident
        ],
        out_specs=pl.BlockSpec((None, tq, D), lambda b, i: (b, i, 0)),
        scratch_shapes=[pltpu.VMEM((tq, D), jnp.float32)],          # per-head context
        compiler_params=pltpu.CompilerParams(
            dimension_semantics=("parallel", "arbitrary"),
            vmem_limit_bytes=_VMEM_LIMIT_BYTES,
        ),
    )(q, k, v, mask8, wo, bo.reshape(1, D))


# ----------------------------------------------------------------------------
# Parameter preparation (once, NOT per forward) and the full forward pass.
# ----------------------------------------------------------------------------
def prepare_mha_params(params, compute_dtype=jnp.bfloat16):
    """Cast weights to the MXU compute dtype and reshape biases once."""
    prep = {}
    for n in ("q", "k", "v", "o"):
        prep["w" + n] = jnp.asarray(params["w" + n], compute_dtype)
        prep["b" + n] = jnp.asarray(params["b" + n], jnp.float32).reshape(1, -1)
    return prep


def _mask_to_int8(mask, B, S_q, S_kv):
    """mask: None, (B, 1, Sq, Sk) or (B, Sq, Sk); value 0 == masked position."""
    if mask is None:
        return jnp.ones((B, S_q, S_kv), jnp.int8)
    m = mask
    if m.ndim == 4:
        m = m[:, 0]                       # (B, 1, Sq, Sk) -> (B, Sq, Sk)
    m = jnp.broadcast_to(m, (B, S_q, S_kv))
    return (m != 0).astype(jnp.int8)      # 4x smaller DMA than an f32 bias


def multi_headed_attention(query, key, value, mask, prepared, h, *,
                           self_attention=True, block_m=512, block_q=256):
    """Forward pass equivalent to the torch MultiHeadedAttention (eval mode).

    `prepared` comes from prepare_mha_params; its dtype is the compute dtype
    (bf16 recommended on v6e/v7x, f32 supported).  `self_attention=True`
    selects the fused single-pass QKV projection (explicit flag instead of the
    jit-dead identity check).
    """
    B, Sq, D = query.shape
    Sk = key.shape[1]
    assert D % h == 0
    cd = prepared["wq"].dtype
    out_dtype = query.dtype

    if self_attention:
        q2d, k2d, v2d = pallas_qkv_projection(
            query.reshape(B * Sq, D).astype(cd),
            prepared["wq"], prepared["wk"], prepared["wv"],
            prepared["bq"], prepared["bk"], prepared["bv"],
            out_dtype=cd, block_m=block_m)
        k2d = k2d.reshape(B, Sq, D)
        v2d = v2d.reshape(B, Sq, D)
    else:
        q2d = pallas_linear(query.reshape(B * Sq, D).astype(cd),
                            prepared["wq"], prepared["bq"], out_dtype=cd, block_m=block_m)
        k2d = pallas_linear(key.reshape(B * Sk, D).astype(cd),
                            prepared["wk"], prepared["bk"], out_dtype=cd,
                            block_m=block_m).reshape(B, Sk, D)
        v2d = pallas_linear(value.reshape(B * Sk, D).astype(cd),
                            prepared["wv"], prepared["bv"], out_dtype=cd,
                            block_m=block_m).reshape(B, Sk, D)

    mask8 = _mask_to_int8(mask, B, Sq, k2d.shape[1])

    # Attention + fused output projection; context never round-trips HBM.
    return pallas_mha_attention(
        q2d.reshape(B, Sq, D), k2d, v2d, mask8,
        prepared["wo"], prepared["bo"],
        num_heads=h, out_dtype=out_dtype, block_q=block_q)


# ----------------------------------------------------------------------------
# Pure-JAX reference (matches the torch module, f32)
# ----------------------------------------------------------------------------
def reference_forward(query, key, value, mask, params, h):
    B, S, D = query.shape
    d_k = D // h

    def lin(x, w, b):
        return x @ w.T + b

    def project(x, w, b):
        return lin(x, w, b).reshape(B, -1, h, d_k).transpose(0, 2, 1, 3)

    q = project(query, params["wq"], params["bq"])
    k = project(key, params["wk"], params["bk"])
    v = project(value, params["wv"], params["bv"])
    scores = jnp.einsum("bhqd,bhkd->bhqk", q, k) / math.sqrt(d_k)
    if mask is not None:
        scores = jnp.where(mask == 0, -1000000000.0, scores)
    p = jax.nn.softmax(scores, axis=-1)
    ctx = jnp.einsum("bhqk,bhkd->bhqd", p, v)
    ctx = ctx.transpose(0, 2, 1, 3).reshape(B, -1, D)
    return lin(ctx, params["wo"], params["bo"])


if __name__ == "__main__":
    # Small, BERT4Rec-consistent shapes.
    B, S, D, H = 2, 8, 32, 4
    assert D % H == 0

    key0 = jax.random.PRNGKey(0)
    ks = jax.random.split(key0, 12)

    # Deterministic init mimicking nn.Linear default (uniform +-1/sqrt(in)).
    bound = 1.0 / math.sqrt(D)

    def uinit(k, shape):
        return jax.random.uniform(k, shape, jnp.float32, -bound, bound)

    params = {
        "wq": uinit(ks[0], (D, D)), "bq": uinit(ks[1], (D,)),
        "wk": uinit(ks[2], (D, D)), "bk": uinit(ks[3], (D,)),
        "wv": uinit(ks[4], (D, D)), "bv": uinit(ks[5], (D,)),
        "wo": uinit(ks[6], (D, D)), "bo": uinit(ks[7], (D,)),
    }

    x_self = jax.random.normal(ks[8], (B, S, D), jnp.float32)
    key_in = jax.random.normal(ks[9], (B, S, D), jnp.float32)
    value_in = jax.random.normal(ks[10], (B, S, D), jnp.float32)

    # Padding-style mask: batch 0 fully valid, batch 1 has last 2 positions masked.
    valid = jnp.array([[1] * S, [1] * (S - 2) + [0] * 2], dtype=jnp.int32)   # (B, S)
    mask = (valid[:, None, :] * valid[:, :, None])[:, None, :, :]            # (B,1,S,S)

    # One-time parameter preparation (done outside the forward, per review).
    prep_bf16 = prepare_mha_params(params, jnp.bfloat16)
    prep_f32 = prepare_mha_params(params, jnp.float32)

    ref_self = reference_forward(x_self, x_self, x_self, mask, params, H)

    # 1) Self-attention, bf16 MXU path (recommended on v6e/v7x).
    out_bf16 = multi_headed_attention(x_self, x_self, x_self, mask, prep_bf16, H,
                                      self_attention=True)
    out_bf16 = jax.block_until_ready(out_bf16)
    assert out_bf16.shape == (B, S, D)
    assert jnp.allclose(out_bf16, ref_self, atol=5e-2, rtol=5e-2), \
        "bf16 self-attention mismatch vs reference"

    # 2) Self-attention, f32 path (tight check; approx reciprocal in softmax).
    out_f32 = multi_headed_attention(x_self, x_self, x_self, mask, prep_f32, H,
                                     self_attention=True)
    out_f32 = jax.block_until_ready(out_f32)
    assert jnp.allclose(out_f32, ref_self, atol=1e-2, rtol=1e-2), \
        "f32 self-attention mismatch vs reference"

    # 3) mask=None path (reuses the same compiled kernels).
    ref_nomask = reference_forward(x_self, x_self, x_self, None, params, H)
    out_nomask = multi_headed_attention(x_self, x_self, x_self, None, prep_f32, H,
                                        self_attention=True)
    out_nomask = jax.block_until_ready(out_nomask)
    assert jnp.allclose(out_nomask, ref_nomask, atol=1e-2, rtol=1e-2), \
        "mask=None self-attention mismatch vs reference"

    # 4) Distinct query/key/value (non-fused projection path), f32.
    ref_cross = reference_forward(x_self, key_in, value_in, mask, params, H)
    out_cross = multi_headed_attention(x_self, key_in, value_in, mask, prep_f32, H,
                                       self_attention=False)
    out_cross = jax.block_until_ready(out_cross)
    assert jnp.allclose(out_cross, ref_cross, atol=1e-2, rtol=1e-2), \
        "cross-attention mismatch vs reference"

    print("KERNEL_OK")
</pallas_src>

<mosaic_0001>
module attributes {stable_mosaic.version = 11 : i64} {
  func.func @_qkv_projection_kernel(%arg0: i32, %arg1: memref<16x32xbf16, #tpu.memory_space<vmem>>, %arg2: memref<32x32xbf16, #tpu.memory_space<vmem>>, %arg3: memref<32x32xbf16, #tpu.memory_space<vmem>>, %arg4: memref<32x32xbf16, #tpu.memory_space<vmem>>, %arg5: memref<1x32xf32, #tpu.memory_space<vmem>>, %arg6: memref<1x32xf32, #tpu.memory_space<vmem>>, %arg7: memref<1x32xf32, #tpu.memory_space<vmem>>, %arg8: memref<16x32xbf16, #tpu.memory_space<vmem>>, %arg9: memref<16x32xbf16, #tpu.memory_space<vmem>>, %arg10: memref<16x32xbf16, #tpu.memory_space<vmem>>) attributes {dimension_semantics = [#tpu.dimension_semantics<parallel>], iteration_bounds = array<i64: 1>, scalar_prefetch = 0 : i64, scratch_operands = 0 : i64, tpu.core_type = #tpu.core_type<tc>, window_params = [{transform_indices = @transform_0, window_bounds = array<i64: 16, 32>}, {pipeline_mode = #tpu.pipeline_mode<synchronous>, transform_indices = @transform_1, window_bounds = array<i64: 32, 32>}, {pipeline_mode = #tpu.pipeline_mode<synchronous>, transform_indices = @transform_2, window_bounds = array<i64: 32, 32>}, {pipeline_mode = #tpu.pipeline_mode<synchronous>, transform_indices = @transform_3, window_bounds = array<i64: 32, 32>}, {pipeline_mode = #tpu.pipeline_mode<synchronous>, transform_indices = @transform_4, window_bounds = array<i64: 1, 32>}, {pipeline_mode = #tpu.pipeline_mode<synchronous>, transform_indices = @transform_5, window_bounds = array<i64: 1, 32>}, {pipeline_mode = #tpu.pipeline_mode<synchronous>, transform_indices = @transform_6, window_bounds = array<i64: 1, 32>}, {transform_indices = @transform_7, window_bounds = array<i64: 16, 32>}, {transform_indices = @transform_8, window_bounds = array<i64: 16, 32>}, {transform_indices = @transform_9, window_bounds = array<i64: 16, 32>}]} {
    %c0 = arith.constant 0 : index
    %c0_0 = arith.constant 0 : index
    %0 = vector.load %arg1[%c0, %c0_0] : memref<16x32xbf16, #tpu.memory_space<vmem>>, vector<16x32xbf16>
    %c0_1 = arith.constant 0 : index
    %c0_2 = arith.constant 0 : index
    %1 = vector.load %arg2[%c0_1, %c0_2] : memref<32x32xbf16, #tpu.memory_space<vmem>>, vector<32x32xbf16>
    %cst = arith.constant dense<0.000000e+00> : vector<16x32xf32>
    %2 = tpu.matmul %0, %1, %cst {dimension_numbers = #tpu.dot_dimension_numbers<[1], [1], [0], [0], [0, 0, 1, 0], [], []>} : vector<16x32xbf16>, vector<32x32xbf16>, vector<16x32xf32> -> vector<16x32xf32>
    %c0_3 = arith.constant 0 : index
    %c0_4 = arith.constant 0 : index
    %3 = vector.load %arg5[%c0_3, %c0_4] : memref<1x32xf32, #tpu.memory_space<vmem>>, vector<1x32xf32>
    %4 = vector.broadcast %3 : vector<1x32xf32> to vector<16x32xf32>
    %5 = arith.addf %2, %4 : vector<16x32xf32>
    %6 = arith.truncf %5 : vector<16x32xf32> to vector<16x32xbf16>
    %c0_5 = arith.constant 0 : index
    %c0_6 = arith.constant 0 : index
    %7 = vector.load %arg8[%c0_5, %c0_6] : memref<16x32xbf16, #tpu.memory_space<vmem>>, vector<16x32xbf16>
    tpu.vector_store %arg8[%c0_5, %c0_6], %6 {strides = array<i32>} : memref<16x32xbf16, #tpu.memory_space<vmem>>, vector<16x32xbf16>,
    %c0_7 = arith.constant 0 : index
    %c0_8 = arith.constant 0 : index
    %8 = vector.load %arg3[%c0_7, %c0_8] : memref<32x32xbf16, #tpu.memory_space<vmem>>, vector<32x32xbf16>
    %cst_9 = arith.constant dense<0.000000e+00> : vector<16x32xf32>
    %9 = tpu.matmul %0, %8, %cst_9 {dimension_numbers = #tpu.dot_dimension_numbers<[1], [1], [0], [0], [0, 0, 1, 0], [], []>} : vector<16x32xbf16>, vector<32x32xbf16>, vector<16x32xf32> -> vector<16x32xf32>
    %c0_10 = arith.constant 0 : index
    %c0_11 = arith.constant 0 : index
    %10 = vector.load %arg6[%c0_10, %c0_11] : memref<1x32xf32, #tpu.memory_space<vmem>>, vector<1x32xf32>
    %11 = vector.broadcast %10 : vector<1x32xf32> to vector<16x32xf32>
    %12 = arith.addf %9, %11 : vector<16x32xf32>
    %13 = arith.truncf %12 : vector<16x32xf32> to vector<16x32xbf16>
    %c0_12 = arith.constant 0 : index
    %c0_13 = arith.constant 0 : index
    %14 = vector.load %arg9[%c0_12, %c0_13] : memref<16x32xbf16, #tpu.memory_space<vmem>>, vector<16x32xbf16>
    tpu.vector_store %arg9[%c0_12, %c0_13], %13 {strides = array<i32>} : memref<16x32xbf16, #tpu.memory_space<vmem>>, vector<16x32xbf16>,
    %c0_14 = arith.constant 0 : index
    %c0_15 = arith.constant 0 : index
    %15 = vector.load %arg4[%c0_14, %c0_15] : memref<32x32xbf16, #tpu.memory_space<vmem>>, vector<32x32xbf16>
    %cst_16 = arith.constant dense<0.000000e+00> : vector<16x32xf32>
    %16 = tpu.matmul %0, %15, %cst_16 {dimension_numbers = #tpu.dot_dimension_numbers<[1], [1], [0], [0], [0, 0, 1, 0], [], []>} : vector<16x32xbf16>, vector<32x32xbf16>, vector<16x32xf32> -> vector<16x32xf32>
    %c0_17 = arith.constant 0 : index
    %c0_18 = arith.constant 0 : index
    %17 = vector.load %arg7[%c0_17, %c0_18] : memref<1x32xf32, #tpu.memory_space<vmem>>, vector<1x32xf32>
    %18 = vector.broadcast %17 : vector<1x32xf32> to vector<16x32xf32>
    %19 = arith.addf %16, %18 : vector<16x32xf32>
    %20 = arith.truncf %19 : vector<16x32xf32> to vector<16x32xbf16>
    %c0_19 = arith.constant 0 : index
    %c0_20 = arith.constant 0 : index
    %21 = vector.load %arg10[%c0_19, %c0_20] : memref<16x32xbf16, #tpu.memory_space<vmem>>, vector<16x32xbf16>
    tpu.vector_store %arg10[%c0_19, %c0_20], %20 {strides = array<i32>} : memref<16x32xbf16, #tpu.memory_space<vmem>>, vector<16x32xbf16>,
    return
  }
  func.func @transform_0(%arg0: i32) -> (i32, i32) {
    %c0_i32 = arith.constant 0 : i32
    %c0_i32_0 = arith.constant 0 : i32
    return %arg0, %c0_i32 : i32, i32
  }
  func.func @transform_1(%arg0: i32) -> (i32, i32) {
    %c0_i32 = arith.constant 0 : i32
    %c0_i32_0 = arith.constant 0 : i32
    %c0_i32_1 = arith.constant 0 : i32
    return %c0_i32, %c0_i32_0 : i32, i32
  }
  func.func @transform_2(%arg0: i32) -> (i32, i32) {
    %c0_i32 = arith.constant 0 : i32
    %c0_i32_0 = arith.constant 0 : i32
    %c0_i32_1 = arith.constant 0 : i32
    return %c0_i32, %c0_i32_0 : i32, i32
  }
  func.func @transform_3(%arg0: i32) -> (i32, i32) {
    %c0_i32 = arith.constant 0 : i32
    %c0_i32_0 = arith.constant 0 : i32
    %c0_i32_1 = arith.constant 0 : i32
    return %c0_i32, %c0_i32_0 : i32, i32
  }
  func.func @transform_4(%arg0: i32) -> (i32, i32) {
    %c0_i32 = arith.constant 0 : i32
    %c0_i32_0 = arith.constant 0 : i32
    %c0_i32_1 = arith.constant 0 : i32
    return %c0_i32, %c0_i32_0 : i32, i32
  }
  func.func @transform_5(%arg0: i32) -> (i32, i32) {
    %c0_i32 = arith.constant 0 : i32
    %c0_i32_0 = arith.constant 0 : i32
    %c0_i32_1 = arith.constant 0 : i32
    return %c0_i32, %c0_i32_0 : i32, i32
  }
  func.func @transform_6(%arg0: i32) -> (i32, i32) {
    %c0_i32 = arith.constant 0 : i32
    %c0_i32_0 = arith.constant 0 : i32
    %c0_i32_1 = arith.constant 0 : i32
    return %c0_i32, %c0_i32_0 : i32, i32
  }
  func.func @transform_7(%arg0: i32) -> (i32, i32) {
    %c0_i32 = arith.constant 0 : i32
    %c0_i32_0 = arith.constant 0 : i32
    return %arg0, %c0_i32 : i32, i32
  }
  func.func @transform_8(%arg0: i32) -> (i32, i32) {
    %c0_i32 = arith.constant 0 : i32
    %c0_i32_0 = arith.constant 0 : i32
    return %arg0, %c0_i32 : i32, i32
  }
  func.func @transform_9(%arg0: i32) -> (i32, i32) {
    %c0_i32 = arith.constant 0 : i32
    %c0_i32_0 = arith.constant 0 : i32
    return %arg0, %c0_i32 : i32, i32
  }
}

</mosaic_0001>

<bundles_post_ra>
// kernel: tpu_custom_call.1
= control target key start
LH: loop header
LB: loop body
LE: loop exit
PB: predicated region body
PF: predicated region fallthrough
CT: control target
= control target key end

     0   :  { %15 = vsyncpa [#allocation3], 0  ;;  %s837_s0 = inlined_call_operand.hbm [shape: bf16[16,32], index: 0, kind: input, shape index: {}]   ;;  %s838_s1 = inlined_call_operand.hbm [shape: bf16[32,32], index: 1, kind: input, shape index: {}]   ;;  %s839_s2 = inlined_call_operand.hbm [shape: bf16[32,32], index: 2, kind: input, shape index: {}]   ;;  %s840_s3 = inlined_call_operand.hbm [shape: bf16[32,32], index: 3, kind: input, shape index: {}]   ;;  %s841_s4 = inlined_call_operand.vmem [shape: f32[1,32], index: 4, kind: input, shape index: {}]   ;;  %s842_s5 = inlined_call_operand.vmem [shape: f32[1,32], index: 5, kind: input, shape index: {}]   ;;  %s843_s6 = inlined_call_operand.vmem [shape: f32[1,32], index: 6, kind: input, shape index: {}]   ;;  %s844_s7 = inlined_call_operand.hbm [shape: bf16[16,32], index: 7, kind: output, shape index: {0}]   ;;  %s845_s8 = inlined_call_operand.hbm [shape: bf16[16,32], index: 8, kind: output, shape index: {1}]   ;;  %s846_s9 = inlined_call_operand.hbm [shape: bf16[16,32], index: 9, kind: output, shape index: {2}]  }
   0x1   :  { %16 = vsyncpa [#allocation6], 0 }
   0x2   :  { %17 = vsyncpa [#allocation9], 0 }
   0x3   :  { %18 = vsyncpa [#allocation4], 0 }
   0x4   :  { %19 = vsyncpa [#allocation12], 0  ;;  %s623_s30 = smov [#allocation5]   ;;  %s624_s11 = smov [#allocation2]  }
   0x5   :  { %s37_s10 = sshll.u32 %s623_s30, 4  ;;  %s25_s12 = sshll.u32 %s624_s11, 4  ;;  %s38_s10 = int_to_ptr.vmem [resolvable:$true] %s37_s10  ;;  %s684_s12 = int_to_ptr.vmem [resolvable:$true] %s25_s12 }
   0x6   :  { %s459_s15 = scalar_lea.hbm %s838_s1, 256 }
   0x7   :  { %p460_p0 = scmp.ne.s32.totalorder %s838_s1, %s459_s15  ;;  %p463_p1 = scmp.lt.u32.totalorder %s459_s15, %s838_s1 }
   0x9   :  { %p465_p2 = pnand %p463_p1, %p460_p0 }
   0xb   :  { %468 = shalt.err (!%p465_p2)
}
   0xc   :  { %s469_s20 = scalar_lea.vmem %s38_s10, 256  ;;  %p474_p4 = scmp.lt.s32.totalorder %s38_s10, %s38_s10 }
   0xd   :  { %p470_p3 = scmp.ne.s32.totalorder %s38_s10, %s469_s20  ;;  %p475_p5 = scmp.lt.s32.totalorder %s469_s20, %s469_s20 }
   0xf   :  { %p476_p6 = por %p475_p5, %p474_p4 }
  0x11   :  { %p477_p7 = pnand %p476_p6, %p470_p3 }
  0x13   :  { %480 = shalt.err (!%p477_p7)
}
  0x14   :  { %s625_s21 = smov 64   ;;  %s626_s22 = smov 4  }
  0x15   :  { %43 = dma.hbm_to_vmem [thread:$0]  %s838_s1, 256, %s38_s10, [#allocation6], %s625_s21, %s625_s21, %s626_s22  }
  0x16   :  { %s481_s27 = scalar_lea.hbm %s837_s0, 128 }
  0x17   :  { %p482_p8 = scmp.ne.s32.totalorder %s837_s0, %s481_s27  ;;  %p485_p9 = scmp.lt.u32.totalorder %s481_s27, %s837_s0 }
  0x19   :  { %p487_p10 = pnand %p485_p9, %p482_p8 }
  0x1b   :  { %490 = shalt.err (!%p487_p10)
}
  0x1c   :  { %s491_s13 = scalar_lea.vmem %s684_s12, 128  ;;  %p496_p12 = scmp.lt.s32.totalorder %s684_s12, %s684_s12 }
  0x1d   :  { %p492_p11 = scmp.ne.s32.totalorder %s684_s12, %s491_s13  ;;  %p497_p13 = scmp.lt.s32.totalorder %s491_s13, %s491_s13 }
  0x1f   :  { %p498_p0 = por %p497_p13, %p496_p12 }
  0x21   :  { %p499_p1 = pnand %p498_p0, %p492_p11 }
  0x23   :  { %502 = shalt.err (!%p499_p1)
}
  0x24   :  { %31 = dma.hbm_to_vmem [thread:$0]  %s837_s0, 128, %s684_s12, [#allocation3], %s625_s21, %s625_s21, %s626_s22  }
  0x25   :  { %s627_s14 = smov [#allocation7]   ;;  %s628_s16 = smov [#allocation8]  }
  0x26   :  { %s49_s15 = sshll.u32 %s627_s14, 4  ;;  %s61_s17 = sshll.u32 %s628_s16, 4  ;;  %s50_s15 = int_to_ptr.vmem [resolvable:$true] %s49_s15  ;;  %s721_s17 = int_to_ptr.vmem [resolvable:$true] %s61_s17 }
  0x27   :  { %s503_s20 = scalar_lea.hbm %s839_s2, 256 }
  0x28   :  { %p504_p2 = scmp.ne.s32.totalorder %s839_s2, %s503_s20  ;;  %p507_p3 = scmp.lt.u32.totalorder %s503_s20, %s839_s2 }
  0x2a   :  { %p509_p4 = pnand %p507_p3, %p504_p2 }
  0x2c   :  { %512 = shalt.err (!%p509_p4)
}
  0x2d   :  { %s513_s0 = scalar_lea.vmem %s50_s15, 256  ;;  %p518_p6 = scmp.lt.s32.totalorder %s50_s15, %s50_s15 }
  0x2e   :  { %p514_p5 = scmp.ne.s32.totalorder %s50_s15, %s513_s0  ;;  %p519_p7 = scmp.lt.s32.totalorder %s513_s0, %s513_s0 }
  0x30   :  { %p520_p8 = por %p519_p7, %p518_p6 }
  0x32   :  { %p521_p9 = pnand %p520_p8, %p514_p5 }
  0x34   :  { %524 = shalt.err (!%p521_p9)
}
  0x35   :  { %55 = dma.hbm_to_vmem [thread:$0]  %s839_s2, 256, %s50_s15, [#allocation6], %s625_s21, %s625_s21, %s626_s22  }
  0x36   :  { %s525_s30 = scalar_lea.hbm %s840_s3, 256 }
  0x37   :  { %p526_p10 = scmp.ne.s32.totalorder %s840_s3, %s525_s30  ;;  %p529_p11 = scmp.lt.u32.totalorder %s525_s30, %s840_s3 }
  0x39   :  { %p531_p12 = pnand %p529_p11, %p526_p10 }
  0x3b   :  { %534 = shalt.err (!%p531_p12)
}
  0x3c   :  { %s535_s14 = scalar_lea.vmem %s721_s17, 256  ;;  %p540_p0 = scmp.lt.s32.totalorder %s721_s17, %s721_s17 }
  0x3d   :  { %p536_p13 = scmp.ne.s32.totalorder %s721_s17, %s535_s14  ;;  %p541_p1 = scmp.lt.s32.totalorder %s535_s14, %s535_s14 }
  0x3f   :  { %p542_p2 = por %p541_p1, %p540_p0 }
  0x41   :  { %p543_p3 = pnand %p542_p2, %p536_p13 }
  0x43   :  { %546 = shalt.err (!%p543_p3)
}
  0x44   :  { %67 = dma.hbm_to_vmem [thread:$0]  %s840_s3, 256, %s721_s17, [#allocation9], %s625_s21, %s625_s21, %s626_s22  }
  0x45   :  { %613 = dma.done.wait [#allocation3], 128  }
  0x46   :  { %614 = vsyncadd [#allocation3], 4294967168 }
  0x47   :  { %615 = dma.done.wait [#allocation6], 512  }
  0x48   :  { %616 = vsyncadd [#allocation6], 4294966784 }
  0x49   :  { %617 = dma.done.wait [#allocation9], 256  }
  0x4a   :  { %618 = vsyncadd [#allocation9], 4294967040  ;;  %v629_v0 = vmov 0.0   ;;  %vm630_vm0 = vmmov 0   ;;  %vm115_vm1 = vcmask 261120   ;;  %v452_v1 = vld [vmem:[#allocation5] sm:$0xff]  }
  0x4b   :  { %417 = vmatprep.subr.bf16.mxu0 %v629_v0  ;;  %425 = vmatprep.subr.bf16.mxu1 %v629_v0  ;;  %v120_v2 = vsel %vm115_vm1, %v452_v1, 0  ;;  %v454_v3 = vld [vmem:[#allocation7] sm:$0xff]   ;;  %v453_v4 = vld [vmem:[#allocation5 + $0x8] sm:$0xff]   ;;  %v457_v6 = vld [vmem:[#allocation7 + $0x8] sm:$0xff]   ;;  %vm174_vm2 = vcmask 257024   ;;  %s631_s19 = smov [#allocation10]  }
  0x4c   :  { %421 = vmatprep.mubr.msk.bf16.mxu0 %vm630_vm0, %v629_v0  ;;  %429 = vmatprep.mubr.msk.bf16.mxu1 %vm630_vm0, %v629_v0  ;;  %v199_v5 = vsel %vm115_vm1, %v454_v3, 0  ;;  %v123_v7 = vsel %vm115_vm1, %v453_v4, 0  ;;  %v202_v8 = vsel %vm115_vm1, %v457_v6, 0  ;;  %v456_v9 = vld [vmem:[#allocation8] sm:$0xff]   ;;  %v455_v10 = vld [vmem:[#allocation2] sm:$0xff]   ;;  %v458_v12 = vld [vmem:[#allocation8 + $0x8] sm:$0xff]  }
  0x4d   :  { %418 = vmatpush3.bf16.xpose.msra.mxu0 %v120_v2  ;;  %426 = vmatpush3.bf16.xpose.msra.mxu1 %v199_v5  ;;  %v277_v11 = vsel %vm115_vm1, %v456_v9, 0  ;;  %v280_v13 = vsel %vm115_vm1, %v458_v12, 0  ;;  %v383_v14 = vld [vmem:[%s841_s4] ss:$0 sm:$0xff]  ;;  %s338_s20 = sshll.u32 %s631_s19, 4  ;;  %s632_s23 = smov [#allocation11]   ;;  %s339_s20 = int_to_ptr.vmem [resolvable:$true] %s338_s20 }
  0x4e   :  { %419 = vmatprep.subr.bf16.mxu0 %v629_v0  ;;  %427 = vmatprep.subr.bf16.mxu1 %v629_v0  ;;  %v390_v16 = vld [vmem:[%s842_s5] ss:$0 sm:$0xff]  ;;  %s350_s4 = sshll.u32 %s632_s23, 4  ;;  %s547_s5 = scalar_lea.vmem %s339_s20, 128  ;;  %s779_s4 = int_to_ptr.vmem [resolvable:$true] %s350_s4 }
  0x4f   :  { %p548_p4 = scmp.ne.s32.totalorder %s339_s20, %s547_s5  ;;  %p552_p5 = scmp.lt.s32.totalorder %s339_s20, %s339_s20 }
  0x50   :  { %p553_p6 = scmp.lt.s32.totalorder %s547_s5, %s547_s5 }
  0x52   :  { %p554_p7 = por %p553_p6, %p552_p5 }
  0x54   :  { %p555_p8 = pnand %p554_p7, %p548_p4 }
  0x55   :  { %420 = vmatpush3.bf16.xpose.msra.mxu0 %v123_v7  ;;  %428 = vmatpush3.bf16.xpose.msra.mxu1 %v202_v8 }
  0x56   :  { %433 = vmatprep.subr.bf16.mxu0 %v629_v0 }
  0x5c   :  { %422 = vmatmul.mubr.msk.bf16.vlgmr.msra.gmra.mrb[0].mxu0 %vm115_vm1, %v455_v10  ;;  %430 = vmatmul.mubr.msk.bf16.vlgmr.msra.gmra.mrb[0].mxu1 %vm115_vm1, %v455_v10 }
  0x5d   :  { %434 = vmatpush3.bf16.xpose.msra.mxu0 %v277_v11  ;;  %437 = vmatprep.mubr.msk.bf16.mxu0 %vm630_vm0, %v629_v0 }
  0x5e   :  { %435 = vmatprep.subr.bf16.mxu0 %v629_v0 }
  0x65   :  { %436 = vmatpush3.bf16.xpose.msra.mxu0 %v280_v13 }
  0x6c   :  { %438 = vmatmul.mubr.msk.bf16.vlgmr.msra.gmra.mrb[4].mxu0 %vm115_vm1, %v455_v10 }
 0x12f   :  { %v159_v15 = vpop.f32.mrb[0].mxu0  ;;  %v238_v20 = vpop.f32.mrb[0].mxu1 }
 0x130   :  { %v160_v17 = vadd.f32 %v383_v14, %v159_v15  ;;  %v423_v18 = vpop.f32.mrb[1].mxu0  ;;  %v239_v24 = vadd.f32 %v390_v16, %v238_v20  ;;  %v431_v25 = vpop.f32.mrb[1].mxu1 }
 0x131   :  { %v162_v19 = vpop.f32.mrb[2].mxu0  ;;  %v241_v26 = vpop.f32.mrb[2].mxu1 }
 0x132   :  { %v402_v21 = vpack.c.bf16 %v160_v17, %v160_v17  ;;  %v163_v22 = vadd.f32 %v383_v14, %v162_v19  ;;  %v424_v23 = vpop.f32.mrb[3].mxu0  ;;  %v404_v28 = vpack.c.bf16 %v239_v24, %v239_v24  ;;  %v242_v29 = vadd.f32 %v390_v16, %v241_v26  ;;  %v432_v30 = vpop.f32.mrb[3].mxu1 }
 0x134   :  { %v403_v27 = vpack.c.bf16 %v163_v22, %v163_v22  ;;  %175 = vst.msk [vmem:[#allocation10] sm:$0xf] %vm174_vm2, %v402_v21  ;;  %v405_v31 = vpack.c.bf16 %v242_v29, %v242_v29  ;;  %253 = vst.msk [vmem:[#allocation11] sm:$0xf] %vm174_vm2, %v404_v28 }
 0x136   :  { %176 = vst.msk [vmem:[#allocation10 + $0x4] sm:$0xf] %vm174_vm2, %v403_v27 }
 0x137   :  { %558 = shalt.err (!%p555_p8)
}
 0x138   :  { %s559_s26 = scalar_lea.hbm %s844_s7, 128 }
 0x139   :  { %p560_p9 = scmp.ne.s32.totalorder %s844_s7, %s559_s26  ;;  %p563_p10 = scmp.lt.u32.totalorder %s559_s26, %s844_s7 }
 0x13b   :  { %p565_p11 = pnand %p563_p10, %p560_p9 }
 0x13d   :  { %568 = shalt.err (!%p565_p11)
}
 0x13e   :  { %344 = dma.vmem_to_hbm [thread:$0]  %s339_s20, 128, %s844_s7, [#allocation4], %s625_s21, %s625_s21, %s626_s22   ;;  %254 = vst.msk [vmem:[#allocation11 + $0x4] sm:$0xf] %vm174_vm2, %v405_v31 }
 0x13f   :  { %s569_s11 = scalar_lea.vmem %s779_s4, 128  ;;  %p574_p13 = scmp.lt.s32.totalorder %s779_s4, %s779_s4 }
 0x140   :  { %p570_p12 = scmp.ne.s32.totalorder %s779_s4, %s569_s11  ;;  %p575_p0 = scmp.lt.s32.totalorder %s569_s11, %s569_s11 }
 0x142   :  { %p576_p1 = por %p575_p0, %p574_p13 }
 0x144   :  { %p577_p2 = pnand %p576_p1, %p570_p12 }
 0x146   :  { %580 = shalt.err (!%p577_p2)
}
 0x147   :  { %s581_s10 = scalar_lea.hbm %s845_s8, 128 }
 0x148   :  { %p582_p3 = scmp.ne.s32.totalorder %s845_s8, %s581_s10  ;;  %p585_p4 = scmp.lt.u32.totalorder %s581_s10, %s845_s8 }
 0x14a   :  { %p587_p5 = pnand %p585_p4, %p582_p3 }
 0x14c   :  { %590 = shalt.err (!%p587_p5)
}
 0x14d   :  { %356 = dma.vmem_to_hbm [thread:$0]  %s779_s4, 128, %s845_s8, [#allocation12], %s625_s21, %s625_s21, %s626_s22   ;;  %v316_v33 = vpop.f32.mrb[4].mxu0 }
 0x14e   :  { %v396_v32 = vld [vmem:[%s843_s6] ss:$0 sm:$0xff]  ;;  %v439_v35 = vpop.f32.mrb[5].mxu0  ;;  %s633_s19 = smov [#allocation13]  }
 0x14f   :  { %v317_v34 = vadd.f32 %v396_v32, %v316_v33  ;;  %v319_v36 = vpop.f32.mrb[6].mxu0  ;;  %s362_s20 = sshll.u32 %s633_s19, 4  ;;  %s363_s20 = int_to_ptr.vmem [resolvable:$true] %s362_s20 }
 0x150   :  { %v320_v38 = vadd.f32 %v396_v32, %v319_v36  ;;  %v440_v39 = vpop.f32.mrb[7].mxu0  ;;  %s591_s8 = scalar_lea.vmem %s363_s20, 128  ;;  %p596_p7 = scmp.lt.s32.totalorder %s363_s20, %s363_s20 }
 0x151   :  { %v406_v37 = vpack.c.bf16 %v317_v34, %v317_v34  ;;  %p592_p6 = scmp.ne.s32.totalorder %s363_s20, %s591_s8  ;;  %p597_p8 = scmp.lt.s32.totalorder %s591_s8, %s591_s8 }
 0x152   :  { %v407_v40 = vpack.c.bf16 %v320_v38, %v320_v38 }
 0x153   :  { %331 = vst.msk [vmem:[#allocation13] sm:$0xf] %vm174_vm2, %v406_v37  ;;  %p598_p9 = por %p597_p8, %p596_p7 }
 0x154   :  { %332 = vst.msk [vmem:[#allocation13 + $0x4] sm:$0xf] %vm174_vm2, %v407_v40 }
 0x155   :  { %p599_p10 = pnand %p598_p9, %p592_p6 }
 0x157   :  { %602 = shalt.err (!%p599_p10)
}
 0x158   :  { %s603_s4 = scalar_lea.hbm %s846_s9, 128 }
 0x159   :  { %p604_p11 = scmp.ne.s32.totalorder %s846_s9, %s603_s4  ;;  %p607_p12 = scmp.lt.u32.totalorder %s603_s4, %s846_s9 }
 0x15b   :  { %p609_p13 = pnand %p607_p12, %p604_p11 }
 0x15d   :  { %612 = shalt.err (!%p609_p13)
}
 0x15e   :  { %368 = dma.vmem_to_hbm [thread:$0]  %s363_s20, 128, %s846_s9, [#allocation12], %s625_s21, %s625_s21, %s626_s22  }
 0x15f   :  { %619 = dma.done.wait [#allocation4], 128  }
 0x160   :  { %620 = vsyncadd [#allocation4], 4294967168 }
 0x161   :  { %621 = dma.done.wait [#allocation12], 256  }
 0x162   :  { %622 = vsyncadd [#allocation12], 4294967040 }
 0x163   :  { %378 = vsyncpa [#allocation3], 1 }
 0x164   :  { %379 = vsyncpa [#allocation6], 1 }
 0x165   :  { %380 = vsyncpa [#allocation9], 1 }
 0x166   :  { %381 = vsyncpa [#allocation4], 1 }
 0x167   :  { %382 = vsyncpa [#allocation12], 1 }

</bundles_post_ra>
